<compile_context>
chip_gen: v7x
topology: tpu7x:2x2x1
jax: 0.10.0
libtpu: 0.0.40
codegen_flags: <defaults>
</compile_context>

<pallas_src>
import math
import functools
import jax
import jax.numpy as jnp
from jax.experimental import pallas as pl
from jax.experimental.pallas import tpu as pltpu

# ------------------------------ hyperparameters ------------------------------
B = 8           # batch of timesteps
DIM = 32        # learned-sinusoidal dim (must be even)
HALF_DIM = DIM // 2
OUT_DIM = DIM + 1   # module returns [B, dim + 1]

_MAX_TILE_B = 512   # batch tile for the gridded / scale-out path


# ---------------------------------- kernel -----------------------------------
def learned_sinusoidal_kernel(x_ref, w_ref, out_ref):
    # x_ref:   [TILE_B, 1]       timesteps
    # w_ref:   [2, OUT_DIM]      row 0 = 2*pi*[0, w, w], row 1 = phase [0,0..,pi/2..]
    # out_ref: [TILE_B, OUT_DIM] = [x, sin(2*pi*x*w), cos(2*pi*x*w)]
    b, n = out_ref.shape

    x = x_ref[...]                                  # [TILE_B, 1]
    w = w_ref[...]                                  # [2, OUT_DIM]
    scale = w[0:1, :]                               # [1, OUT_DIM]
    phase = w[1:2, :]                               # [1, OUT_DIM]

    # Single EUP transcendental: cos is folded in via the +pi/2 phase lanes.
    s = jnp.sin(x * scale + phase)                  # [TILE_B, OUT_DIM]

    lane = jax.lax.broadcasted_iota(jnp.int32, (b, n), 1)
    # lane 0 -> raw x (scale/phase are 0 there so s is finite everywhere).
    out_ref[...] = jnp.where(lane == 0, x, s)


# ------------------------------- init-time pack ------------------------------
def pack_sinusoidal_weights(weights):
    """One-time (module-init) packing of the learned weights.

    Returns a [2, 2*half_dim + 1] f32 array:
      row 0: 2*pi * [0, w, w]   (frequency scale per output lane)
      row 1: [0, 0...,0, pi/2...pi/2]  (phase; turns sin into cos for the
                                        second half of the fouriered lanes)
    """
    w = weights.astype(jnp.float32)
    half = w.shape[0]
    zero1 = jnp.zeros((1,), jnp.float32)
    scale_row = (2.0 * math.pi) * jnp.concatenate([zero1, w, w])
    phase_row = jnp.concatenate(
        [jnp.zeros((1 + half,), jnp.float32),
         jnp.full((half,), 0.5 * math.pi, jnp.float32)])
    return jnp.stack([scale_row, phase_row], axis=0)   # [2, OUT_DIM]


# ---------------------------------- wrapper -----------------------------------
@functools.partial(jax.jit, static_argnames=("out_dim",))
def learned_sinusoidal_pos_emb(x, w_packed, *, out_dim):
    """x: f32 [B], w_packed: f32 [2, out_dim] from pack_sinusoidal_weights."""
    assert w_packed.shape == (2, out_dim)
    half = (out_dim - 1) // 2
    assert 2 * half + 1 == out_dim, "out_dim must be 2*half_dim + 1 (odd)"

    x2d = x.astype(jnp.float32).reshape(-1, 1)        # [B, 1]
    b = x2d.shape[0]

    # Pad the batch to a multiple of 8 sublanes (and tile it for large B).
    tile_b = min(_MAX_TILE_B, max(8, ((b + 7) // 8) * 8))
    b_pad = ((b + tile_b - 1) // tile_b) * tile_b
    if b_pad != b:
        x2d = jnp.pad(x2d, ((0, b_pad - b), (0, 0)))
    grid = (b_pad // tile_b,)

    cost = pl.CostEstimate(
        flops=3 * b_pad * out_dim,
        transcendentals=b_pad * (out_dim - 1),
        bytes_accessed=4 * (b_pad + 2 * out_dim + b_pad * out_dim),
    )

    out = pl.pallas_call(
        learned_sinusoidal_kernel,
        out_shape=jax.ShapeDtypeStruct((b_pad, out_dim), jnp.float32),
        grid_spec=pltpu.PrefetchScalarGridSpec(
            num_scalar_prefetch=0,
            grid=grid,
            in_specs=[
                pl.BlockSpec((tile_b, 1), lambda i: (i, 0)),
                pl.BlockSpec((2, out_dim), lambda i: (0, 0)),
            ],
            out_specs=pl.BlockSpec((tile_b, out_dim), lambda i: (i, 0)),
        ),
        compiler_params=pltpu.CompilerParams(
            dimension_semantics=("parallel",)),
        cost_estimate=cost,
    )(x2d, w_packed)

    return out[:b] if b_pad != b else out


# ------------------------------ pure-JAX reference ----------------------------
def learned_sinusoidal_pos_emb_ref(x, weights):
    x = x.astype(jnp.float32)
    freqs = x[:, None] * weights[None, :] * (2.0 * math.pi)
    fouriered = jnp.concatenate([jnp.sin(freqs), jnp.cos(freqs)], axis=-1)
    return jnp.concatenate([x[:, None], fouriered], axis=-1)


# ------------------------------------ main ------------------------------------
if __name__ == "__main__":
    key = jax.random.PRNGKey(0)
    kw, kx = jax.random.split(key)
    weights = jax.random.normal(kw, (HALF_DIM,), dtype=jnp.float32)   # nn.Parameter(randn(half_dim))
    x = jax.random.uniform(kx, (B,), dtype=jnp.float32) * 10.0        # synthetic timesteps

    # One-time ("module init") packing, hoisted out of the per-call path.
    w_packed = jax.block_until_ready(pack_sinusoidal_weights(weights))

    out = learned_sinusoidal_pos_emb(x, w_packed, out_dim=OUT_DIM)
    out = jax.block_until_ready(out)

    ref = jax.block_until_ready(learned_sinusoidal_pos_emb_ref(x, weights))
    assert out.shape == (B, OUT_DIM) and out.dtype == jnp.float32
    assert jnp.allclose(out, ref, atol=1e-5, rtol=1e-5), (
        f"max err {jnp.max(jnp.abs(out - ref))}")
    print("KERNEL_OK")
</pallas_src>

<mosaic_0001>
module attributes {stable_mosaic.version = 11 : i64} {
  func.func @learned_sinusoidal_kernel(%arg0: i32, %arg1: memref<8x1xf32, #tpu.memory_space<vmem>>, %arg2: memref<2x33xf32, #tpu.memory_space<vmem>>, %arg3: memref<8x33xf32, #tpu.memory_space<vmem>>) attributes {dimension_semantics = [#tpu.dimension_semantics<parallel>], iteration_bounds = array<i64: 1>, scalar_prefetch = 0 : i64, scratch_operands = 0 : i64, tpu.core_type = #tpu.core_type<tc>, window_params = [{transform_indices = @transform_0, window_bounds = array<i64: 8, 1>}, {pipeline_mode = #tpu.pipeline_mode<synchronous>, transform_indices = @transform_1, window_bounds = array<i64: 2, 33>}, {transform_indices = @transform_2, window_bounds = array<i64: 8, 33>}]} {
    %c0 = arith.constant 0 : index
    %c0_0 = arith.constant 0 : index
    %0 = vector.load %arg1[%c0, %c0_0] : memref<8x1xf32, #tpu.memory_space<vmem>>, vector<8x1xf32>
    %c0_1 = arith.constant 0 : index
    %c0_2 = arith.constant 0 : index
    %1 = vector.load %arg2[%c0_1, %c0_2] : memref<2x33xf32, #tpu.memory_space<vmem>>, vector<2x33xf32>
    %2 = vector.extract_strided_slice %1 {offsets = [0, 0], sizes = [1, 33], strides = [1, 1]} : vector<2x33xf32> to vector<1x33xf32>
    %3 = vector.extract_strided_slice %1 {offsets = [1, 0], sizes = [1, 33], strides = [1, 1]} : vector<2x33xf32> to vector<1x33xf32>
    %4 = vector.broadcast %0 : vector<8x1xf32> to vector<8x33xf32>
    %5 = vector.broadcast %2 : vector<1x33xf32> to vector<8x33xf32>
    %6 = arith.mulf %4, %5 : vector<8x33xf32>
    %7 = vector.broadcast %3 : vector<1x33xf32> to vector<8x33xf32>
    %8 = arith.addf %6, %7 : vector<8x33xf32>
    %9 = math.sin %8 : vector<8x33xf32>
    %10 = tpu.iota {dimensions = array<i32: 1>} : vector<8x33xi32>
    %c0_i32 = arith.constant 0 : i32
    %11 = vector.broadcast %c0_i32 : i32 to vector<8x33xi32>
    %12 = arith.cmpi eq, %10, %11 : vector<8x33xi32>
    %13 = vector.shape_cast %0 : vector<8x1xf32> to vector<8x1xf32>
    %14 = vector.broadcast %13 : vector<8x1xf32> to vector<8x33xf32>
    %15 = arith.select %12, %14, %9 : vector<8x33xi1>, vector<8x33xf32>
    %c0_3 = arith.constant 0 : index
    %c0_4 = arith.constant 0 : index
    %16 = vector.load %arg3[%c0_3, %c0_4] : memref<8x33xf32, #tpu.memory_space<vmem>>, vector<8x33xf32>
    tpu.vector_store %arg3[%c0_3, %c0_4], %15 {strides = array<i32>} : memref<8x33xf32, #tpu.memory_space<vmem>>, vector<8x33xf32>,
    return
  }
  func.func @transform_0(%arg0: i32) -> (i32, i32) {
    %c0_i32 = arith.constant 0 : i32
    %c0_i32_0 = arith.constant 0 : i32
    return %arg0, %c0_i32 : i32, i32
  }
  func.func @transform_1(%arg0: i32) -> (i32, i32) {
    %c0_i32 = arith.constant 0 : i32
    %c0_i32_0 = arith.constant 0 : i32
    %c0_i32_1 = arith.constant 0 : i32
    return %c0_i32, %c0_i32_0 : i32, i32
  }
  func.func @transform_2(%arg0: i32) -> (i32, i32) {
    %c0_i32 = arith.constant 0 : i32
    %c0_i32_0 = arith.constant 0 : i32
    return %arg0, %c0_i32 : i32, i32
  }
}

</mosaic_0001>

<bundles_post_ra>
// kernel: learned_sinusoidal_pos_emb.1
= control target key start
LH: loop header
LB: loop body
LE: loop exit
PB: predicated region body
PF: predicated region fallthrough
CT: control target
= control target key end

     0   :  { %v198_v1 = vmov 0   ;;  %s266_s0 = inlined_call_operand.vmem [shape: f32[8,1], index: 0, kind: input, shape index: {}]   ;;  %s267_s1 = inlined_call_operand.vmem [shape: f32[2,33], index: 1, kind: input, shape index: {}]   ;;  %s268_s2 = inlined_call_operand.hbm [shape: f32[8,33], index: 2, kind: output, shape index: {}]  }
   0x1   :  { %v12_v0 = vld [vmem:[%s266_s0] sm:$0xff]  ;;  %169 = vset.pattern.permute.xlu0 %v198_v1 }
   0x2   :  { %16 = vperm.xlu0 %169, %v12_v0  }
   0x3   :  { %7 = vsyncpa [#allocation3], 0  ;;  %v19_v2 = vlaneseq  ;;  %v13_v5 = vld [vmem:[%s267_s1] sm:$0x3]  ;;  %v199_v22 = vmov 683565275  }
   0x4   :  { %v200_v24 = vmov 2475754826   ;;  %v201_v27 = vmov 2131351028   ;;  %v202_v30 = vmov 2102212464  }
   0x5   :  { %v20_v3 = vshrl.u32 %v19_v2, 7  ;;  %v203_v33 = vmov 920167782   ;;  %v204_v36 = vmov 1326507024   ;;  %s205_s0 = smov [#allocation2]  }
   0x6   :  { %s145_s1 = sshll.u32 %s205_s0, 4  ;;  %vm137_vm14 = vcmask 269312   ;;  %s146_s1 = int_to_ptr.vmem [resolvable:$true] %s145_s1 }
   0x7   :  { %v21_v4 = vsub.s32 0, %v20_v3  ;;  %v26_v6 = vsub.s32 1, %v20_v3  ;;  %s174_s13 = scalar_lea.vmem %s146_s1, 128  ;;  %p179_p1 = scmp.lt.s32.totalorder %s146_s1, %s146_s1 }
   0x8   :  { %p175_p0 = scmp.ne.s32.totalorder %s146_s1, %s174_s13  ;;  %p180_p2 = scmp.lt.s32.totalorder %s174_s13, %s174_s13 }
   0x9   :  { %v22_v7 = vrot.slane %v13_v5, %v21_v4  ;;  %v27_v8 = vrot.slane %v13_v5, %v26_v6 }
   0xa   :  { %p181_p3 = por %p180_p2, %p179_p1 }
   0xc   :  { %p182_p4 = pnand %p181_p3, %p175_p0 }
  0x81   :  { %v228_v9 = vpop.permute.xlu0 %16 }
  0x82   :  { %v23_v10 = vmul.f32 %v22_v7, %v228_v9 }
  0x84   :  { %v231_v11 = vadd.f32 %v27_v8, %v23_v10 }
  0x86   :  { %v32_v12 = vand.u32 2139095040, %v231_v11  ;;  %v29_v16 = vand.u32 2147483647, %v231_v11  ;;  %vm31_vm7 = vcmp.lt.s32.totalorder %v231_v11, 0  ;;  %vm121_vm13 = vweird.f32 %v231_v11 }
  0x88   :  { %v33_v13 = vshrl.u32 %v32_v12, 23  ;;  %v36_v19 = vand.u32 8388607, %v29_v16  ;;  %vm30_vm8 = vcmp.le.f32.partialorder %v29_v16, 0.7853982 }
  0x8a   :  { %v153_v14 = vadd.s32 4294967169, %v33_v13  ;;  %v37_v38 = vor.u32 8388608, %v36_v19 }
  0x8c   :  { %v39_v15 = vadd.s32 1, %v153_v14  ;;  %v77_v52 = vshll.u32 %v37_v38, 8 }
  0x8e   :  { %vm40_vm0 = vcmp.gt.s32.totalorder %v39_v15, 0 }
  0x8f   :  { %v41_v17 = vsel %vm40_vm0, %v39_v15, 0 }
  0x90   :  { %v43_v18 = vand.u32 31, %v41_v17  ;;  %v42_v21 = vshrl.u32 %v41_v17, 5 }
  0x92   :  { %v44_v20 = vsub.s32 32, %v43_v18  ;;  %v46_v23 = vshll.u32 %v199_v22, %v43_v18  ;;  %v49_v25 = vshll.u32 %v200_v24, %v43_v18  ;;  %v52_v29 = vshll.u32 %v201_v27, %v43_v18 }
  0x93   :  { %v55_v32 = vshll.u32 %v202_v30, %v43_v18  ;;  %v58_v35 = vshll.u32 %v203_v33, %v43_v18  ;;  %vm61_vm1 = vcmp.lt.s32.totalorder %v42_v21, 1  ;;  %vm64_vm2 = vcmp.lt.s32.totalorder %v42_v21, 4 }
  0x94   :  { %v47_v26 = vshrl.u32 %v200_v24, %v44_v20  ;;  %v50_v28 = vshrl.u32 %v201_v27, %v44_v20  ;;  %v53_v31 = vshrl.u32 %v202_v30, %v44_v20  ;;  %v56_v34 = vshrl.u32 %v203_v33, %v44_v20 }
  0x95   :  { %v59_v37 = vshrl.u32 %v204_v36, %v44_v20  ;;  %v45_v47 = vshrl.u32 %v199_v22, %v44_v20  ;;  %vm63_vm3 = vcmp.lt.s32.totalorder %v42_v21, 3  ;;  %vm62_vm4 = vcmp.lt.s32.totalorder %v42_v21, 2 }
  0x96   :  { %v48_v39 = vor.u32 %v47_v26, %v46_v23  ;;  %v51_v40 = vor.u32 %v50_v28, %v49_v25  ;;  %v54_v41 = vor.u32 %v53_v31, %v52_v29  ;;  %v57_v42 = vor.u32 %v56_v34, %v55_v32 }
  0x97   :  { %v60_v43 = vor.u32 %v59_v37, %v58_v35  ;;  %v134_v36 = vand.u32 127, %v19_v2 }
  0x98   :  { %v66_v44 = vsel %vm64_vm2, %v54_v41, 2102212464  ;;  %v69_v45 = vsel %vm61_vm1, %v48_v39, %v51_v40  ;;  %v73_v46 = vsel %vm61_vm1, %v51_v40, %v54_v41  ;;  %v70_v48 = vsel %vm64_vm2, %v57_v42, 920167782 }
  0x99   :  { %v74_v49 = vsel %vm64_vm2, %v60_v43, 1326507024  ;;  %v71_v50 = vsel %vm63_vm3, %v54_v41, %v70_v48  ;;  %v65_v53 = vsel %vm61_vm1, %v45_v47, %v48_v39  ;;  %v67_v54 = vsel %vm63_vm3, %v51_v40, %v66_v44 }
  0x9a   :  { %v75_v51 = vsel %vm63_vm3, %v57_v42, %v74_v49  ;;  %v72_v55 = vsel %vm62_vm4, %v69_v45, %v71_v50  ;;  %v68_v61 = vsel %vm62_vm4, %v65_v53, %v67_v54  ;;  %vm135_vm11 = vcmp.eq.s32.totalorder %v134_v36, 0 }
  0x9b   :  { %v76_v56 = vsel %vm62_vm4, %v73_v46, %v75_v51  ;;  %v240_v59 = vmul.u32.u64.low %v77_v52, %v72_v55  ;;  %v241_v60 = vmul.u32.u64.high %v77_v52, %v72_v55, %v240_v59  ;;  %v84_v63 = vmul.u32 %v77_v52, %v68_v61 }
  0x9c   :  { %v237_v57 = vmul.u32.u64.low %v77_v52, %v76_v56  ;;  %v238_v58 = vmul.u32.u64.high %v77_v52, %v76_v56, %v237_v57 }
  0x9d   :  { %v87_v62 = vadd.s32 1, %v241_v60 }
  0x9e   :  { %vm86_vm5 = vc.u32 %v238_v58, %v240_v59  ;;  %v85_v14 = vadd.s32 %v240_v59, %v238_v58 }
  0x9f   :  { %v88_v0 = vsel %vm86_vm5, %v87_v62, %v241_v60 }
  0xa0   :  { %v89_v1 = vadd.s32 %v88_v0, %v84_v63 }
  0xa2   :  { %v90_v3 = vadd.s32 536870912, %v89_v1 }
  0xa4   :  { %v91_v4 = vshrl.u32 %v90_v3, 30 }
  0xa6   :  { %v92_v5 = vshll.u32 %v91_v4, 30  ;;  %v115_v27 = vsub.s32 4, %v91_v4 }
  0xa8   :  { %v93_v6 = vsub.s32 %v89_v1, %v92_v5  ;;  %v116_v30 = vsel %vm31_vm7, %v115_v27, %v91_v4 }
  0xa9   :  { %v118_v32 = vsel %vm30_vm8, 0, %v116_v30 }
  0xaa   :  { %v95_v7 = vsub.s32 0, %v93_v6  ;;  %v122_v33 = vadd.s32 3, %v118_v32 }
  0xac   :  { %v154_v8 = vmin.u32 %v95_v7, %v93_v6  ;;  %v123_v34 = vand.u32 3, %v122_v33 }
  0xae   :  { %v97_v10 = vclz %v154_v8  ;;  %vm128_vm9 = vcmp.eq.s32.totalorder %v123_v34, 2  ;;  %vm125_vm10 = vcmp.eq.s32.totalorder %v123_v34, 0  ;;  %vm124_vm12 = vcmp.lt.s32.totalorder %v123_v34, 2 }
  0xb0   :  { %v155_v12 = vadd.s32 4294967294, %v97_v10 }
  0xb2   :  { %vm156_vm6 = vcmp.lt.s32.totalorder %v155_v12, 0 }
  0xb3   :  { %v100_v13 = vsel %vm156_vm6, 0, %v155_v12 }
  0xb4   :  { %v101_v15 = vsub.s32 32, %v100_v13  ;;  %v105_v17 = vsub.s32 4294967266, %v100_v13  ;;  %v102_v18 = vshll.u32 %v93_v6, %v100_v13 }
  0xb6   :  { %v103_v19 = vshrl.u32 %v85_v14, %v101_v15  ;;  %v106_v20 = vadd.s32 127, %v105_v17 }
  0xb8   :  { %v104_v21 = vor.u32 %v103_v19, %v102_v18  ;;  %v107_v22 = vshll.u32 %v106_v20, 23 }
  0xba   :  { %v108_v23 = vor.u32 4788187, %v107_v22  ;;  %v111_v25 = vcvt.s32.f32 %v104_v21 }
  0xbc   :  { %v109_v24 = vand.u32 2147483647, %v108_v23 }
  0xbe   :  { %v112_v26 = vmul.f32 %v111_v25, %v109_v24 }
  0xc0   :  { %v113_v28 = vxor.u32 2147483648, %v112_v26 }
  0xc2   :  { %v114_v29 = vsel %vm31_vm7, %v113_v28, %v112_v26 }
  0xc3   :  { %v117_v31 = vsel %vm30_vm8, %v231_v11, %v114_v29 }
  0xc4   :  { %170 = vcosq.f32 %v117_v31 }
  0xc5   :  { %172 = vsinq.f32 %v117_v31 }
  0xce   :  { %v171_v35 = vpop.eup %170 }
  0xcf   :  { %v173_v37 = vpop.eup %172  ;;  %v129_v38 = vxor.u32 2147483648, %v171_v35 }
  0xd0   :  { %v126_v39 = vxor.u32 2147483648, %v173_v37 }
  0xd1   :  { %v130_v40 = vsel %vm128_vm9, %v129_v38, %v173_v37 }
  0xd2   :  { %v127_v16 = vsel %vm125_vm10, %v171_v35, %v126_v39 }
  0xd3   :  { %v131_v41 = vsel %vm124_vm12, %v127_v16, %v130_v40 }
  0xd4   :  { %v132_v42 = vsel %vm121_vm13, nan, %v131_v41 }
  0xd5   :  { %v136_v43 = vsel %vm135_vm11, %v228_v9, %v132_v42 }
  0xd6   :  { %138 = vst.msk [vmem:[#allocation2] sm:$0xff] %vm137_vm14, %v136_v43 }
  0xd7   :  { %185 = shalt.err (!%p182_p4)
}
  0xd8   :  { %s186_s16 = scalar_lea.hbm %s268_s2, 128 }
  0xd9   :  { %p187_p5 = scmp.ne.s32.totalorder %s268_s2, %s186_s16  ;;  %p190_p6 = scmp.lt.u32.totalorder %s186_s16, %s268_s2 }
  0xdb   :  { %p192_p7 = pnand %p190_p6, %p187_p5 }
  0xdd   :  { %195 = shalt.err (!%p192_p7)
}
  0xde   :  { %148 = dma.vmem_to_hbm [thread:$0]  %s146_s1, 128, %s268_s2, [#allocation3]  }
  0xdf   :  { %196 = dma.done.wait [#allocation3], 128  }
  0xe0   :  { %197 = vsyncadd [#allocation3], 4294967168 }
  0xe1   :  { %152 = vsyncpa [#allocation3], 1 }

</bundles_post_ra>
